<compile_context>
chip_gen: v7x
topology: tpu7x:2x2x1
jax: 0.10.0
libtpu: 0.0.40
codegen_flags: <defaults>
</compile_context>

<pallas_src>
import functools

import jax
import jax.numpy as jnp
from jax.experimental import pallas as pl
from jax.experimental.pallas import tpu as pltpu


def _round_up(x, m):
    return (x + m - 1) // m * m


def _tensorcores_per_chip():
    """Best-effort TensorCore count per chip (controls the megacore tiling trick)."""
    try:
        kind = jax.devices()[0].device_kind.lower()
    except Exception:
        return 1
    # v4 (megacore) and v7x expose 2 TensorCores per device; v2/v3/v5e/v6e expose 1.
    return 2 if ("v4" in kind or "v7" in kind or "7x" in kind) else 1


def _vmem_per_step_bytes(block_b, d, weight_bytes, param_bufs):
    """Rough per-grid-step VMEM footprint used to cap block_b (v7x has 64 MiB)."""
    x_stream = 2 * block_b * d * 4                       # double-buffered f32 input tile
    out_stream = 2 * block_b * 4                         # double-buffered f32 output tile
    # live activations (f32 + bf16 copies), with ~2x headroom for compiler temps
    interm = 2 * block_b * (256 * 6 + 128 * 6 + 64 * 6 + 16 * 8)
    bias_rep = param_bufs * block_b * (64 + 16) * 4      # lane-replicated b3/b4
    return x_stream + out_stream + interm + bias_rep + param_bufs * weight_bytes


def _mlp_kernel(x_ref,
                w1_ref, b1_ref,
                w2_ref, b2_ref,
                w3t_ref, b3_ref,
                w4t_ref, b4_ref,
                w5_ref, b5_ref,
                o_ref):
    """Fused 5-layer MLP (+ReLU, +sigmoid) on one (block_b,)-sized batch tile."""
    # Cast the streamed f32 tile to bf16 in-kernel (cheap VPU pack; HBM reads stay f32-only).
    x = x_ref[...].astype(jnp.bfloat16)                              # (block_b, D)

    # Layer 1: D -> 256 (bf16 MXU inputs, f32 accumulation); ReLU on bf16 (same values).
    h = jnp.dot(x, w1_ref[...], preferred_element_type=jnp.float32) + b1_ref[...]
    h = jnp.maximum(h.astype(jnp.bfloat16), 0.0)                     # (block_b, 256) bf16

    # Layer 2: 256 -> 128
    h = jnp.dot(h, w2_ref[...], preferred_element_type=jnp.float32) + b2_ref[...]
    # Cast to bf16 *before* the layout switch so the XLU transpose moves half the
    # vregs, then go feature-major so layers 3-5 and the final store are lane-dense.
    ht = jnp.maximum(h.astype(jnp.bfloat16), 0.0).T                  # (128, block_b) bf16

    # Layer 3: 128 -> 64 (transposed form: out.T = W3 @ h.T)
    h = jnp.dot(w3t_ref[...], ht, preferred_element_type=jnp.float32) + b3_ref[...]
    h = jnp.maximum(h.astype(jnp.bfloat16), 0.0)                     # (64, block_b) bf16

    # Layer 4: 64 -> 16 (keep f32 ReLU: this activation feeds the f32 final layer)
    h = jnp.dot(w4t_ref[...], h, preferred_element_type=jnp.float32) + b4_ref[...]
    h = jnp.maximum(h, 0.0)                                          # (16, block_b) f32

    # Layer 5: 16 -> 1 as broadcast-multiply + sublane reduce (avoids an M=1 matmul),
    # then exact sigmoid on the tiny (1, block_b) tile.
    logits = jnp.sum(h * w5_ref[...], axis=0, keepdims=True) + b5_ref[...]   # (1, block_b)
    o_ref[...] = (1.0 / (1.0 + jnp.exp(-logits))).astype(o_ref.dtype)


def init_mlp_params(input_size, key):
    """Matches the PyTorch module: weights ~ N(0, 1/(input_size+1)), biases = 0.
    Stored in the torch layout: W_i is (out_features, in_features), b_i is (out_features,)."""
    dims = [input_size, 256, 128, 64, 16, 1]
    std = 1.0 / (input_size + 1)
    keys = jax.random.split(key, len(dims) - 1)
    params = []
    for k, (din, dout) in zip(keys, zip(dims[:-1], dims[1:])):
        w = std * jax.random.normal(k, (dout, din), dtype=jnp.float32)
        b = jnp.zeros((dout,), dtype=jnp.float32)
        params.append((w, b))
    return params


@functools.partial(jax.jit, static_argnames=("block_b",))
def mlp_forward(x, params, block_b=1024):
    """x: (B, input_size) float32 -> (B, 1) float32 sigmoid scores."""
    B, D = x.shape
    (w1, b1), (w2, b2), (w3, b3), (w4, b4), (w5, b5) = params

    # ---- choose the batch tile (static: derived from shapes + device kind) --------
    num_tc = _tensorcores_per_chip()
    block_b = max(128, (int(block_b) // 128) * 128)       # lane/MXU-friendly multiple of 128
    block_b = min(block_b, _round_up(B, 128))             # never bigger than the padded batch

    weight_bytes = ((D * 256 + 256 * 128 + 64 * 128 + 16 * 64) * 2
                    + (256 + 128 + 16 + 1) * 4)
    # Weights are never re-fetched (constant index_map); for large D drop their second
    # pipeline buffer so they do not eat into v7x's 64 MiB VMEM.
    single_buffer_params = D * 256 * 2 > (1 << 20)
    param_bufs = 1 if single_buffer_params else 2

    vmem_budget = 24 * 1024 * 1024                        # headroom under the 32 MiB scoped limit
    while block_b > 128 and _vmem_per_step_bytes(block_b, D, weight_bytes, param_bufs) > vmem_budget:
        block_b -= 128

    if num_tc >= 2 and B > 128 and _round_up(B, block_b) == block_b:
        # Grid would collapse to a single step: halve the tile so both TensorCores get
        # work (dimension_semantics=("parallel",) shards the grid across cores).
        # Single-TC chips (v5e/v6e) keep the full tile - fewer, larger steps.
        block_b = max(128, (block_b // 2 // 128) * 128)

    # ---- prepare operands ----------------------------------------------------------
    # x stays f32 (kernel casts to bf16). Pad only when B is ragged w.r.t. block_b;
    # padded rows produce garbage scores that are sliced off below.
    if B % block_b:
        xp = jnp.pad(x, ((0, _round_up(B, block_b) - B), (0, 0)))
    else:
        xp = x
    b_total = xp.shape[0]
    grid = b_total // block_b

    ops = [
        w1.T.astype(jnp.bfloat16), b1.reshape(1, 256),               # layer 1: (D, 256)
        w2.T.astype(jnp.bfloat16), b2.reshape(1, 128),               # layer 2: (256, 128)
        w3.astype(jnp.bfloat16),                                     # layer 3 (transposed form): (64, 128)
        jnp.broadcast_to(b3.reshape(64, 1), (64, block_b)),          #   lane-replicated bias
        w4.astype(jnp.bfloat16),                                     # layer 4 (transposed form): (16, 64)
        jnp.broadcast_to(b4.reshape(16, 1), (16, block_b)),          #   lane-replicated bias
        w5.reshape(16, 1).astype(jnp.float32), b5.reshape(1, 1),     # layer 5: column weight + scalar bias
    ]

    # Parameters: full blocks with a constant index_map -> resident in VMEM across steps.
    if single_buffer_params:
        param_specs = [pl.BlockSpec(p.shape, lambda i: (0, 0), pipeline_mode=pl.Buffered(1))
                       for p in ops]
    else:
        param_specs = [pl.BlockSpec(p.shape, lambda i: (0, 0)) for p in ops]

    flops = 2 * b_total * (D * 256 + 256 * 128 + 128 * 64 + 64 * 16 + 16 * 1)
    bytes_accessed = (b_total * D * 4 + b_total * 4
                      + sum(int(p.size) * p.dtype.itemsize for p in ops))

    out2d = pl.pallas_call(
        _mlp_kernel,
        out_shape=jax.ShapeDtypeStruct((grid, block_b), jnp.float32),
        grid_spec=pltpu.PrefetchScalarGridSpec(
            num_scalar_prefetch=0,
            grid=(grid,),
            in_specs=[pl.BlockSpec((block_b, D), lambda i: (i, 0))] + param_specs,
            out_specs=pl.BlockSpec((1, block_b), lambda i: (i, 0)),
        ),
        compiler_params=pltpu.CompilerParams(
            dimension_semantics=("parallel",),
            vmem_limit_bytes=32 * 1024 * 1024,
        ),
        cost_estimate=pl.CostEstimate(
            flops=flops, transcendentals=b_total, bytes_accessed=bytes_accessed),
    )(xp, *ops)

    # (grid, block_b) row-major == (padded) batch order; drop padding, restore (B, 1).
    return out2d.reshape(-1)[:B].reshape(B, 1)


def mlp_reference(x, params):
    """Pure-JAX reference mirroring the kernel's numerics (bf16 MXU inputs, f32 accum)."""
    h_bf16 = x.astype(jnp.bfloat16)
    h_f32 = None
    for (w, b) in params[:-1]:
        h_f32 = jnp.dot(h_bf16, w.T.astype(jnp.bfloat16),
                        preferred_element_type=jnp.float32) + b
        h_f32 = jnp.maximum(h_f32, 0.0)
        h_bf16 = h_f32.astype(jnp.bfloat16)
    w5, b5 = params[-1]
    logits = h_f32 @ w5.T + b5                                       # final layer in f32
    return jax.nn.sigmoid(logits)


if __name__ == "__main__":
    key = jax.random.PRNGKey(0)
    k_x, k_p = jax.random.split(key)

    input_size = 32
    batch = 16

    x = jax.random.normal(k_x, (batch, input_size), dtype=jnp.float32)
    params = init_mlp_params(input_size, k_p)

    out = mlp_forward(x, params)
    jax.block_until_ready(out)

    ref = mlp_reference(x, params)
    assert out.shape == (batch, 1)
    assert jnp.allclose(out, ref, atol=2e-3, rtol=2e-3), (out, ref)

    print("KERNEL_OK")
</pallas_src>

<mosaic_0001>
module attributes {stable_mosaic.version = 11 : i64} {
  func.func @_mlp_kernel(%arg0: i32, %arg1: memref<128x32xf32, #tpu.memory_space<vmem>>, %arg2: memref<32x256xbf16, #tpu.memory_space<vmem>>, %arg3: memref<1x256xf32, #tpu.memory_space<vmem>>, %arg4: memref<256x128xbf16, #tpu.memory_space<vmem>>, %arg5: memref<1x128xf32, #tpu.memory_space<vmem>>, %arg6: memref<64x128xbf16, #tpu.memory_space<vmem>>, %arg7: memref<64x128xf32, #tpu.memory_space<vmem>>, %arg8: memref<16x64xbf16, #tpu.memory_space<vmem>>, %arg9: memref<16x128xf32, #tpu.memory_space<vmem>>, %arg10: memref<16x1xf32, #tpu.memory_space<vmem>>, %arg11: memref<1x1xf32, #tpu.memory_space<vmem>>, %arg12: memref<1x128xf32, #tpu.memory_space<vmem>>) attributes {dimension_semantics = [#tpu.dimension_semantics<parallel>], iteration_bounds = array<i64: 1>, scalar_prefetch = 0 : i64, scratch_operands = 0 : i64, tpu.core_type = #tpu.core_type<tc>, window_params = [{transform_indices = @transform_0, window_bounds = array<i64: 128, 32>}, {pipeline_mode = #tpu.pipeline_mode<synchronous>, transform_indices = @transform_1, window_bounds = array<i64: 32, 256>}, {pipeline_mode = #tpu.pipeline_mode<synchronous>, transform_indices = @transform_2, window_bounds = array<i64: 1, 256>}, {pipeline_mode = #tpu.pipeline_mode<synchronous>, transform_indices = @transform_3, window_bounds = array<i64: 256, 128>}, {pipeline_mode = #tpu.pipeline_mode<synchronous>, transform_indices = @transform_4, window_bounds = array<i64: 1, 128>}, {pipeline_mode = #tpu.pipeline_mode<synchronous>, transform_indices = @transform_5, window_bounds = array<i64: 64, 128>}, {pipeline_mode = #tpu.pipeline_mode<synchronous>, transform_indices = @transform_6, window_bounds = array<i64: 64, 128>}, {pipeline_mode = #tpu.pipeline_mode<synchronous>, transform_indices = @transform_7, window_bounds = array<i64: 16, 64>}, {pipeline_mode = #tpu.pipeline_mode<synchronous>, transform_indices = @transform_8, window_bounds = array<i64: 16, 128>}, {pipeline_mode = #tpu.pipeline_mode<synchronous>, transform_indices = @transform_9, window_bounds = array<i64: 16, 1>}, {pipeline_mode = #tpu.pipeline_mode<synchronous>, transform_indices = @transform_10, window_bounds = array<i64: 1, 1>}, {transform_indices = @transform_11, window_bounds = array<i64: 1, 128>}]} {
    %c0 = arith.constant 0 : index
    %c0_0 = arith.constant 0 : index
    %0 = vector.load %arg1[%c0, %c0_0] : memref<128x32xf32, #tpu.memory_space<vmem>>, vector<128x32xf32>
    %1 = arith.truncf %0 : vector<128x32xf32> to vector<128x32xbf16>
    %c0_1 = arith.constant 0 : index
    %c0_2 = arith.constant 0 : index
    %2 = vector.load %arg2[%c0_1, %c0_2] : memref<32x256xbf16, #tpu.memory_space<vmem>>, vector<32x256xbf16>
    %cst = arith.constant dense<0.000000e+00> : vector<128x256xf32>
    %3 = tpu.matmul %1, %2, %cst {dimension_numbers = #tpu.dot_dimension_numbers<[1], [0], [0], [1], [0, 0, 1, 1], [], []>} : vector<128x32xbf16>, vector<32x256xbf16>, vector<128x256xf32> -> vector<128x256xf32>
    %c0_3 = arith.constant 0 : index
    %c0_4 = arith.constant 0 : index
    %4 = vector.load %arg3[%c0_3, %c0_4] : memref<1x256xf32, #tpu.memory_space<vmem>>, vector<1x256xf32>
    %5 = vector.broadcast %4 : vector<1x256xf32> to vector<128x256xf32>
    %6 = arith.addf %3, %5 : vector<128x256xf32>
    %7 = arith.truncf %6 : vector<128x256xf32> to vector<128x256xbf16>
    %cst_5 = arith.constant 0.000000e+00 : bf16
    %8 = vector.broadcast %cst_5 : bf16 to vector<128x256xbf16>
    %9 = arith.maximumf %7, %8 : vector<128x256xbf16>
    %c0_6 = arith.constant 0 : index
    %c0_7 = arith.constant 0 : index
    %10 = vector.load %arg4[%c0_6, %c0_7] : memref<256x128xbf16, #tpu.memory_space<vmem>>, vector<256x128xbf16>
    %cst_8 = arith.constant dense<0.000000e+00> : vector<128x128xf32>
    %11 = tpu.matmul %9, %10, %cst_8 {dimension_numbers = #tpu.dot_dimension_numbers<[1], [0], [0], [1], [0, 0, 1, 1], [], []>} : vector<128x256xbf16>, vector<256x128xbf16>, vector<128x128xf32> -> vector<128x128xf32>
    %c0_9 = arith.constant 0 : index
    %c0_10 = arith.constant 0 : index
    %12 = vector.load %arg5[%c0_9, %c0_10] : memref<1x128xf32, #tpu.memory_space<vmem>>, vector<1x128xf32>
    %13 = vector.broadcast %12 : vector<1x128xf32> to vector<128x128xf32>
    %14 = arith.addf %11, %13 : vector<128x128xf32>
    %15 = arith.truncf %14 : vector<128x128xf32> to vector<128x128xbf16>
    %cst_11 = arith.constant 0.000000e+00 : bf16
    %16 = vector.broadcast %cst_11 : bf16 to vector<128x128xbf16>
    %17 = arith.maximumf %15, %16 : vector<128x128xbf16>
    %18 = tpu.transpose %17, [1, 0] : vector<128x128xbf16> -> vector<128x128xbf16>
    %c0_12 = arith.constant 0 : index
    %c0_13 = arith.constant 0 : index
    %19 = vector.load %arg6[%c0_12, %c0_13] : memref<64x128xbf16, #tpu.memory_space<vmem>>, vector<64x128xbf16>
    %cst_14 = arith.constant dense<0.000000e+00> : vector<64x128xf32>
    %20 = tpu.matmul %19, %18, %cst_14 {dimension_numbers = #tpu.dot_dimension_numbers<[1], [0], [0], [1], [0, 0, 1, 1], [], []>} : vector<64x128xbf16>, vector<128x128xbf16>, vector<64x128xf32> -> vector<64x128xf32>
    %c0_15 = arith.constant 0 : index
    %c0_16 = arith.constant 0 : index
    %21 = vector.load %arg7[%c0_15, %c0_16] : memref<64x128xf32, #tpu.memory_space<vmem>>, vector<64x128xf32>
    %22 = arith.addf %20, %21 : vector<64x128xf32>
    %23 = arith.truncf %22 : vector<64x128xf32> to vector<64x128xbf16>
    %cst_17 = arith.constant 0.000000e+00 : bf16
    %24 = vector.broadcast %cst_17 : bf16 to vector<64x128xbf16>
    %25 = arith.maximumf %23, %24 : vector<64x128xbf16>
    %c0_18 = arith.constant 0 : index
    %c0_19 = arith.constant 0 : index
    %26 = vector.load %arg8[%c0_18, %c0_19] : memref<16x64xbf16, #tpu.memory_space<vmem>>, vector<16x64xbf16>
    %cst_20 = arith.constant dense<0.000000e+00> : vector<16x128xf32>
    %27 = tpu.matmul %26, %25, %cst_20 {dimension_numbers = #tpu.dot_dimension_numbers<[1], [0], [0], [1], [0, 0, 1, 1], [], []>} : vector<16x64xbf16>, vector<64x128xbf16>, vector<16x128xf32> -> vector<16x128xf32>
    %c0_21 = arith.constant 0 : index
    %c0_22 = arith.constant 0 : index
    %28 = vector.load %arg9[%c0_21, %c0_22] : memref<16x128xf32, #tpu.memory_space<vmem>>, vector<16x128xf32>
    %29 = arith.addf %27, %28 : vector<16x128xf32>
    %cst_23 = arith.constant 0.000000e+00 : f32
    %30 = vector.broadcast %cst_23 : f32 to vector<16x128xf32>
    %31 = arith.maximumf %29, %30 : vector<16x128xf32>
    %c0_24 = arith.constant 0 : index
    %c0_25 = arith.constant 0 : index
    %32 = vector.load %arg10[%c0_24, %c0_25] : memref<16x1xf32, #tpu.memory_space<vmem>>, vector<16x1xf32>
    %33 = vector.broadcast %32 : vector<16x1xf32> to vector<16x128xf32>
    %34 = arith.mulf %31, %33 : vector<16x128xf32>
    %cst_26 = arith.constant dense<0.000000e+00> : vector<128xf32>
    %35 = vector.multi_reduction <add>, %34, %cst_26 [0] : vector<16x128xf32> to vector<128xf32>
    %36 = vector.shape_cast %35 : vector<128xf32> to vector<1x128xf32>
    %c0_27 = arith.constant 0 : index
    %c0_28 = arith.constant 0 : index
    %37 = vector.load %arg11[%c0_27, %c0_28] : memref<1x1xf32, #tpu.memory_space<vmem>>, vector<1x1xf32>
    %38 = vector.broadcast %37 : vector<1x1xf32> to vector<1x128xf32>
    %39 = arith.addf %36, %38 : vector<1x128xf32>
    %cst_29 = arith.constant 0.000000e+00 : f32
    %40 = vector.broadcast %cst_29 : f32 to vector<1x128xf32>
    %41 = arith.subf %40, %39 : vector<1x128xf32>
    %42 = math.exp %41 : vector<1x128xf32>
    %cst_30 = arith.constant 1.000000e+00 : f32
    %43 = vector.broadcast %cst_30 : f32 to vector<1x128xf32>
    %44 = arith.addf %43, %42 : vector<1x128xf32>
    %cst_31 = arith.constant 1.000000e+00 : f32
    %45 = vector.broadcast %cst_31 : f32 to vector<1x128xf32>
    %46 = arith.divf %45, %44 : vector<1x128xf32>
    %c0_32 = arith.constant 0 : index
    %c0_33 = arith.constant 0 : index
    %47 = vector.load %arg12[%c0_32, %c0_33] : memref<1x128xf32, #tpu.memory_space<vmem>>, vector<1x128xf32>
    tpu.vector_store %arg12[%c0_32, %c0_33], %46 {strides = array<i32>} : memref<1x128xf32, #tpu.memory_space<vmem>>, vector<1x128xf32>,
    return
  }
  func.func @transform_0(%arg0: i32) -> (i32, i32) {
    %c0_i32 = arith.constant 0 : i32
    %c0_i32_0 = arith.constant 0 : i32
    return %arg0, %c0_i32 : i32, i32
  }
  func.func @transform_1(%arg0: i32) -> (i32, i32) {
    %c0_i32 = arith.constant 0 : i32
    %c0_i32_0 = arith.constant 0 : i32
    %c0_i32_1 = arith.constant 0 : i32
    return %c0_i32, %c0_i32_0 : i32, i32
  }
  func.func @transform_2(%arg0: i32) -> (i32, i32) {
    %c0_i32 = arith.constant 0 : i32
    %c0_i32_0 = arith.constant 0 : i32
    %c0_i32_1 = arith.constant 0 : i32
    return %c0_i32, %c0_i32_0 : i32, i32
  }
  func.func @transform_3(%arg0: i32) -> (i32, i32) {
    %c0_i32 = arith.constant 0 : i32
    %c0_i32_0 = arith.constant 0 : i32
    %c0_i32_1 = arith.constant 0 : i32
    return %c0_i32, %c0_i32_0 : i32, i32
  }
  func.func @transform_4(%arg0: i32) -> (i32, i32) {
    %c0_i32 = arith.constant 0 : i32
    %c0_i32_0 = arith.constant 0 : i32
    %c0_i32_1 = arith.constant 0 : i32
    return %c0_i32, %c0_i32_0 : i32, i32
  }
  func.func @transform_5(%arg0: i32) -> (i32, i32) {
    %c0_i32 = arith.constant 0 : i32
    %c0_i32_0 = arith.constant 0 : i32
    %c0_i32_1 = arith.constant 0 : i32
    return %c0_i32, %c0_i32_0 : i32, i32
  }
  func.func @transform_6(%arg0: i32) -> (i32, i32) {
    %c0_i32 = arith.constant 0 : i32
    %c0_i32_0 = arith.constant 0 : i32
    %c0_i32_1 = arith.constant 0 : i32
    return %c0_i32, %c0_i32_0 : i32, i32
  }
  func.func @transform_7(%arg0: i32) -> (i32, i32) {
    %c0_i32 = arith.constant 0 : i32
    %c0_i32_0 = arith.constant 0 : i32
    %c0_i32_1 = arith.constant 0 : i32
    return %c0_i32, %c0_i32_0 : i32, i32
  }
  func.func @transform_8(%arg0: i32) -> (i32, i32) {
    %c0_i32 = arith.constant 0 : i32
    %c0_i32_0 = arith.constant 0 : i32
    %c0_i32_1 = arith.constant 0 : i32
    return %c0_i32, %c0_i32_0 : i32, i32
  }
  func.func @transform_9(%arg0: i32) -> (i32, i32) {
    %c0_i32 = arith.constant 0 : i32
    %c0_i32_0 = arith.constant 0 : i32
    %c0_i32_1 = arith.constant 0 : i32
    return %c0_i32, %c0_i32_0 : i32, i32
  }
  func.func @transform_10(%arg0: i32) -> (i32, i32) {
    %c0_i32 = arith.constant 0 : i32
    %c0_i32_0 = arith.constant 0 : i32
    %c0_i32_1 = arith.constant 0 : i32
    return %c0_i32, %c0_i32_0 : i32, i32
  }
  func.func @transform_11(%arg0: i32) -> (i32, i32) {
    %c0_i32 = arith.constant 0 : i32
    %c0_i32_0 = arith.constant 0 : i32
    return %arg0, %c0_i32 : i32, i32
  }
}

</mosaic_0001>

<bundles_post_ra>
// kernel: mlp_forward.1
= control target key start
LH: loop header
LB: loop body
LE: loop exit
PB: predicated region body
PF: predicated region fallthrough
CT: control target
= control target key end

     0   :  { %v919_v1 = vmov 0   ;;  %vm101_vm0 = vcmask 261120   ;;  %v71_v45 = vlaneseq  ;;  %vm921_vm1 = vmmov 0   ;;  %s1261_s1 = inlined_call_operand.vmem [shape: bf16[32,256], index: 1, kind: input, shape index: {}]   ;;  %s1262_s0 = inlined_call_operand.vmem [shape: f32[128,32], index: 0, kind: input, shape index: {}]   ;;  %s1263_s3 = inlined_call_operand.vmem [shape: bf16[256,128], index: 3, kind: input, shape index: {}]   ;;  %s1264_s2 = inlined_call_operand.vmem [shape: f32[1,256], index: 2, kind: input, shape index: {}]   ;;  %s1265_s5 = inlined_call_operand.vmem [shape: bf16[64,128], index: 5, kind: input, shape index: {}]   ;;  %s1266_s4 = inlined_call_operand.vmem [shape: f32[1,128], index: 4, kind: input, shape index: {}]   ;;  %s1267_s7 = inlined_call_operand.vmem [shape: bf16[16,64], index: 7, kind: input, shape index: {}]   ;;  %s1268_s9 = inlined_call_operand.vmem [shape: f32[16,1], index: 9, kind: input, shape index: {}]   ;;  %s1269_s10 = inlined_call_operand.<no memory space> [shape: f32[1,1], index: 10, kind: input, shape index: {}]   ;;  %s1270_s6 = inlined_call_operand.vmem [shape: f32[64,128], index: 6, kind: input, shape index: {}]   ;;  %s1271_s8 = inlined_call_operand.vmem [shape: f32[16,128], index: 8, kind: input, shape index: {}]   ;;  %s1272_s11 = inlined_call_operand.vmem [shape: f32[1,128], index: 11, kind: output, shape index: {}]  }
   0x1   :  { %v888_v0 = vld [vmem:[%s1261_s1 + $0x4] ss:$8 sps:$4 sm:$0xff]   ;;  %158 = vmatprep.mubr.bf16.mxu0 %v919_v1  ;;  %886 = vset.pattern.permute.xlu0 %v919_v1  ;;  %v890_v2 = vld [vmem:[%s1261_s1] ss:$8 sps:$4 sm:$0xff]   ;;  %v891_v3 = vld [vmem:[%s1261_s1 + $0x14] ss:$8 sps:$4 sm:$0xff]  }
   0x2   :  { %887 = vset.pattern.permute.xlu1 %v919_v1  ;;  %126 = vmatprep.subr.bf16.mxu0 %v888_v0  ;;  %v893_v4 = vld [vmem:[%s1261_s1 + $0x10] ss:$8 sps:$4 sm:$0xff]   ;;  %v41_v5 = vld [vmem:[%s1262_s0] sm:$0xff]  ;;  %v42_v6 = vld [vmem:[%s1262_s0 + $0x8] sm:$0xff]  ;;  %v1108_v46 = vshrl.u32 %v71_v45, 7  ;;  %vm641_vm2 = vcmask 523264  }
   0x3   :  { %127 = vmatpush1.bf16.msra.mxu0 %v890_v2  ;;  %v57_v7 = vpack.c.bf16 %v42_v6, %v41_v5  ;;  %v894_v8 = vld [vmem:[%s1263_s3 + $0x40] sm:$0xff]   ;;  %v43_v9 = vld [vmem:[%s1262_s0 + $0x10] sm:$0xff]  ;;  %v44_v10 = vld [vmem:[%s1262_s0 + $0x18] sm:$0xff] }
   0x4   :  { %128 = vmatprep.subr.bf16.mxu0 %v891_v3  ;;  %v895_v11 = vld [vmem:[%s1263_s3] sm:$0xff]   ;;  %766 = vmatprep.subr.bf16.mxu1 %v894_v8  ;;  %v896_v12 = vld [vmem:[%s1263_s3 + $0x48] sm:$0xff]   ;;  %v898_v14 = vld [vmem:[%s1263_s3 + $0x50] sm:$0xff]   ;;  %v58_v15 = vpack.c.bf16 %v44_v10, %v43_v9  ;;  %v73_v47 = vsub.s32 0, %v1108_v46  ;;  %v77_v49 = vsub.s32 1, %v1108_v46 }
   0x5   :  { %767 = vmatpush3.bf16.msra.mxu1 %v895_v11  ;;  %v897_v13 = vld [vmem:[%s1263_s3 + $0x8] sm:$0xff]   ;;  %v899_v16 = vld [vmem:[%s1263_s3 + $0x10] sm:$0xff]   ;;  %v900_v17 = vld [vmem:[%s1263_s3 + $0x58] sm:$0xff]  }
   0x6   :  { %768 = vmatprep.subr.bf16.mxu1 %v896_v12  ;;  %v45_v18 = vld [vmem:[%s1262_s0 + $0x20] sm:$0xff]  ;;  %v46_v19 = vld [vmem:[%s1262_s0 + $0x28] sm:$0xff]  ;;  %v901_v20 = vld [vmem:[%s1263_s3 + $0x18] sm:$0xff]  }
   0x7   :  { %129 = vmatpush1.bf16.msra.mxu0 %v893_v4  ;;  %v902_v21 = vld [vmem:[%s1263_s3 + $0x60] sm:$0xff]   ;;  %v59_v22 = vpack.c.bf16 %v46_v19, %v45_v18  ;;  %v904_v24 = vld [vmem:[%s1263_s3 + $0x68] sm:$0xff]   ;;  %v47_v25 = vld [vmem:[%s1262_s0 + $0x30] sm:$0xff] }
   0x8   :  { %v903_v23 = vld [vmem:[%s1263_s3 + $0x20] sm:$0xff]   ;;  %v48_v26 = vld [vmem:[%s1262_s0 + $0x38] sm:$0xff]  ;;  %v50_v29 = vld [vmem:[%s1262_s0 + $0x48] sm:$0xff] }
   0x9   :  { %769 = vmatpush3.bf16.msra.mxu1 %v897_v13  ;;  %v60_v27 = vpack.c.bf16 %v48_v26, %v47_v25  ;;  %v49_v28 = vld [vmem:[%s1262_s0 + $0x40] sm:$0xff]  ;;  %v51_v31 = vld [vmem:[%s1262_s0 + $0x50] sm:$0xff]  ;;  %v52_v32 = vld [vmem:[%s1262_s0 + $0x58] sm:$0xff] }
   0xa   :  { %735 = vmatmul.mubr.msk.bf16.vlgmr.msra.gmra.mrb[0].mxu0 %vm101_vm0, %v57_v7  ;;  %770 = vmatprep.subr.bf16.mxu1 %v898_v14  ;;  %v61_v30 = vpack.c.bf16 %v50_v29, %v49_v28  ;;  %v62_v33 = vpack.c.bf16 %v52_v32, %v51_v31  ;;  %v53_v34 = vld [vmem:[%s1262_s0 + $0x60] sm:$0xff]  ;;  %v54_v35 = vld [vmem:[%s1262_s0 + $0x68] sm:$0xff]  ;;  %v55_v37 = vld [vmem:[%s1262_s0 + $0x70] sm:$0xff] }
   0xb   :  { %168 = vmatprep.mubr.bf16.mxu0 %v919_v1  ;;  %v63_v36 = vpack.c.bf16 %v54_v35, %v53_v34  ;;  %v56_v38 = vld [vmem:[%s1262_s0 + $0x78] sm:$0xff]  ;;  %v905_v40 = vld [vmem:[%s1263_s3 + $0x28] sm:$0xff]   ;;  %v906_v41 = vld [vmem:[%s1263_s3 + $0x70] sm:$0xff]  }
   0xc   :  { %v64_v39 = vpack.c.bf16 %v56_v38, %v55_v37  ;;  %v907_v42 = vld [vmem:[%s1263_s3 + $0x30] sm:$0xff]   ;;  %v908_v43 = vld [vmem:[%s1263_s3 + $0x78] sm:$0xff]   ;;  %v69_v48 = vld [vmem:[%s1264_s2] sm:$0x3] }
   0xd   :  { %771 = vmatpush3.bf16.msra.mxu1 %v899_v16  ;;  %v909_v44 = vld [vmem:[%s1263_s3 + $0x38] sm:$0xff]   ;;  %v1117_v50 = vrot.slane %v69_v48, %v73_v47  ;;  %v1119_v52 = vrot.slane %v69_v48, %v77_v49 }
   0xe   :  { %772 = vmatprep.subr.bf16.mxu1 %v900_v17 }
  0x11   :  { %773 = vmatpush3.bf16.msra.mxu1 %v901_v20 }
  0x12   :  { %736 = vmatmul.mubr.msk.bf16.gmra.mrb[4].mxu0 %vm101_vm0, %v58_v15  ;;  %774 = vmatprep.subr.bf16.mxu1 %v902_v21 }
  0x13   :  { %178 = vmatprep.mubr.bf16.mxu0 %v919_v1 }
  0x15   :  { %775 = vmatpush3.bf16.msra.mxu1 %v903_v23 }
  0x16   :  { %776 = vmatprep.subr.bf16.mxu1 %v904_v24 }
  0x19   :  { %777 = vmatpush3.bf16.msra.mxu1 %v905_v40 }
  0x1a   :  { %737 = vmatmul.mubr.msk.bf16.gmra.mrb[8].mxu0 %vm101_vm0, %v59_v22  ;;  %778 = vmatprep.subr.bf16.mxu1 %v906_v41 }
  0x1b   :  { %188 = vmatprep.mubr.bf16.mxu0 %v919_v1 }
  0x1d   :  { %779 = vmatpush3.bf16.msra.mxu1 %v907_v42 }
  0x1e   :  { %780 = vmatprep.subr.bf16.mxu1 %v908_v43 }
  0x21   :  { %781 = vmatpush3.bf16.msra.mxu1 %v909_v44 }
  0x22   :  { %738 = vmatmul.mubr.msk.bf16.gmra.mrb[12].mxu0 %vm101_vm0, %v60_v27 }
  0x23   :  { %198 = vmatprep.mubr.bf16.mxu0 %v919_v1 }
  0x2a   :  { %739 = vmatmul.mubr.msk.bf16.gmra.mrb[16].mxu0 %vm101_vm0, %v61_v30 }
  0x2b   :  { %208 = vmatprep.mubr.bf16.mxu0 %v919_v1 }
  0x32   :  { %740 = vmatmul.mubr.msk.bf16.gmra.mrb[20].mxu0 %vm101_vm0, %v62_v33 }
  0x33   :  { %218 = vmatprep.mubr.bf16.mxu0 %v919_v1 }
  0x3a   :  { %741 = vmatmul.mubr.msk.bf16.gmra.mrb[24].mxu0 %vm101_vm0, %v63_v36 }
  0x3b   :  { %228 = vmatprep.mubr.bf16.mxu0 %v919_v1 }
  0x42   :  { %742 = vmatmul.mubr.msk.bf16.gmra.mrb[28].mxu0 %vm101_vm0, %v64_v39 }
  0xdd   :  { %v160_v51 = vpop.f32.mrb[0].mxu0 }
  0xde   :  { %v162_v53 = vpop.f32.mrb[1].mxu0  ;;  %v161_v55 = vadd.f32 %v160_v51, %v1117_v50 }
  0xdf   :  { %v164_v54 = vpop.f32.mrb[2].mxu0  ;;  %v163_v58 = vadd.f32 %v162_v53, %v1119_v52 }
  0xe0   :  { %v165_v56 = vadd.f32 %v164_v54, %v1117_v50  ;;  %v166_v57 = vpop.f32.mrb[3].mxu0 }
  0xe1   :  { %v167_v59 = vadd.f32 %v166_v57, %v1119_v52 }
  0xe2   :  { %v239_v60 = vpack.c.bf16 %v165_v56, %v161_v55 }
  0xe3   :  { %v240_v61 = vpack.c.bf16 %v167_v59, %v163_v58 }
  0xe4   :  { %v255_v2 = vmax.bf16 %v919_v1, %v239_v60 }
  0xe5   :  { %v170_v62 = vpop.f32.mrb[4].mxu0  ;;  %v256_v63 = vmax.bf16 %v919_v1, %v240_v61 }
  0xe6   :  { %v172_v0 = vpop.f32.mrb[5].mxu0  ;;  %v171_v4 = vadd.f32 %v170_v62, %v1117_v50 }
  0xe7   :  { %v174_v3 = vpop.f32.mrb[6].mxu0  ;;  %438 = vmatprep.mubr.bf16.mxu1 %v256_v63  ;;  %v173_v7 = vadd.f32 %v172_v0, %v1119_v52 }
  0xe8   :  { %v175_v5 = vadd.f32 %v174_v3, %v1117_v50  ;;  %v176_v6 = vpop.f32.mrb[7].mxu0  ;;  %439 = vmatmul.mubr.bf16.vlgmr.msra.gmra.mrb[0].mxu1 %v255_v2 }
  0xe9   :  { %v177_v8 = vadd.f32 %v176_v6, %v1119_v52 }
  0xea   :  { %v241_v9 = vpack.c.bf16 %v175_v5, %v171_v4 }
  0xeb   :  { %v242_v10 = vpack.c.bf16 %v177_v8, %v173_v7 }
  0xec   :  { %v257_v14 = vmax.bf16 %v919_v1, %v241_v9 }
  0xed   :  { %v180_v11 = vpop.f32.mrb[8].mxu0  ;;  %v258_v12 = vmax.bf16 %v919_v1, %v242_v10 }
  0xee   :  { %v182_v13 = vpop.f32.mrb[9].mxu0  ;;  %v181_v16 = vadd.f32 %v180_v11, %v1117_v50 }
  0xef   :  { %v184_v15 = vpop.f32.mrb[10].mxu0  ;;  %446 = vmatprep.mubr.bf16.mxu1 %v258_v12  ;;  %v183_v19 = vadd.f32 %v182_v13, %v1119_v52 }
  0xf0   :  { %v185_v17 = vadd.f32 %v184_v15, %v1117_v50  ;;  %v186_v18 = vpop.f32.mrb[11].mxu0  ;;  %447 = vmatmul.mubr.bf16.gmra.mrb[4].mxu1 %v257_v14 }
  0xf1   :  { %v187_v20 = vadd.f32 %v186_v18, %v1119_v52 }
  0xf2   :  { %v243_v21 = vpack.c.bf16 %v185_v17, %v181_v16 }
  0xf3   :  { %v244_v22 = vpack.c.bf16 %v187_v20, %v183_v19 }
  0xf4   :  { %v259_v26 = vmax.bf16 %v919_v1, %v243_v21 }
  0xf5   :  { %v190_v23 = vpop.f32.mrb[12].mxu0  ;;  %v260_v24 = vmax.bf16 %v919_v1, %v244_v22 }
  0xf6   :  { %v192_v25 = vpop.f32.mrb[13].mxu0  ;;  %v191_v28 = vadd.f32 %v190_v23, %v1117_v50 }
  0xf7   :  { %v194_v27 = vpop.f32.mrb[14].mxu0  ;;  %454 = vmatprep.mubr.bf16.mxu1 %v260_v24  ;;  %v193_v31 = vadd.f32 %v192_v25, %v1119_v52 }
  0xf8   :  { %v195_v29 = vadd.f32 %v194_v27, %v1117_v50  ;;  %v196_v30 = vpop.f32.mrb[15].mxu0  ;;  %455 = vmatmul.mubr.bf16.gmra.mrb[8].mxu1 %v259_v26  ;;  %v910_v26 = vld [vmem:[%s1265_s5] sm:$0xff]  }
  0xf9   :  { %v197_v32 = vadd.f32 %v196_v30, %v1119_v52  ;;  %863 = vmatprep.mubr.bf16.mxu0 %v910_v26 }
  0xfa   :  { %v245_v33 = vpack.c.bf16 %v195_v29, %v191_v28 }
  0xfb   :  { %v246_v34 = vpack.c.bf16 %v197_v32, %v193_v31 }
  0xfc   :  { %v261_v38 = vmax.bf16 %v919_v1, %v245_v33 }
  0xfd   :  { %v200_v35 = vpop.f32.mrb[16].mxu0  ;;  %v262_v36 = vmax.bf16 %v919_v1, %v246_v34 }
  0xfe   :  { %v202_v37 = vpop.f32.mrb[17].mxu0  ;;  %v201_v40 = vadd.f32 %v200_v35, %v1117_v50 }
  0xff   :  { %v204_v39 = vpop.f32.mrb[18].mxu0  ;;  %462 = vmatprep.mubr.bf16.mxu1 %v262_v36  ;;  %v203_v43 = vadd.f32 %v202_v37, %v1119_v52 }
 0x100   :  { %v205_v41 = vadd.f32 %v204_v39, %v1117_v50  ;;  %v206_v42 = vpop.f32.mrb[19].mxu0  ;;  %463 = vmatmul.mubr.bf16.gmra.mrb[12].mxu1 %v261_v38 }
 0x101   :  { %v207_v44 = vadd.f32 %v206_v42, %v1119_v52 }
 0x102   :  { %v247_v45 = vpack.c.bf16 %v205_v41, %v201_v40 }
 0x103   :  { %v248_v48 = vpack.c.bf16 %v207_v44, %v203_v43 }
 0x104   :  { %v263_v54 = vmax.bf16 %v919_v1, %v247_v45 }
 0x105   :  { %v210_v49 = vpop.f32.mrb[20].mxu0  ;;  %v264_v51 = vmax.bf16 %v919_v1, %v248_v48 }
 0x106   :  { %v212_v53 = vpop.f32.mrb[21].mxu0  ;;  %v211_v56 = vadd.f32 %v210_v49, %v1117_v50 }
 0x107   :  { %v214_v55 = vpop.f32.mrb[22].mxu0  ;;  %470 = vmatprep.mubr.bf16.mxu1 %v264_v51  ;;  %v213_v59 = vadd.f32 %v212_v53, %v1119_v52 }
 0x108   :  { %v215_v57 = vadd.f32 %v214_v55, %v1117_v50  ;;  %v216_v58 = vpop.f32.mrb[23].mxu0  ;;  %471 = vmatmul.mubr.bf16.gmra.mrb[16].mxu1 %v263_v54 }
 0x109   :  { %v217_v60 = vadd.f32 %v216_v58, %v1119_v52 }
 0x10a   :  { %v249_v61 = vpack.c.bf16 %v215_v57, %v211_v56 }
 0x10b   :  { %v250_v62 = vpack.c.bf16 %v217_v60, %v213_v59 }
 0x10c   :  { %v265_v3 = vmax.bf16 %v919_v1, %v249_v61 }
 0x10d   :  { %v220_v63 = vpop.f32.mrb[24].mxu0  ;;  %v266_v0 = vmax.bf16 %v919_v1, %v250_v62 }
 0x10e   :  { %v222_v2 = vpop.f32.mrb[25].mxu0  ;;  %v221_v5 = vadd.f32 %v220_v63, %v1117_v50 }
 0x10f   :  { %v224_v4 = vpop.f32.mrb[26].mxu0  ;;  %478 = vmatprep.mubr.bf16.mxu1 %v266_v0  ;;  %v223_v8 = vadd.f32 %v222_v2, %v1119_v52 }
 0x110   :  { %v225_v6 = vadd.f32 %v224_v4, %v1117_v50  ;;  %v226_v7 = vpop.f32.mrb[27].mxu0  ;;  %479 = vmatmul.mubr.bf16.gmra.mrb[20].mxu1 %v265_v3 }
 0x111   :  { %v227_v9 = vadd.f32 %v226_v7, %v1119_v52 }
 0x112   :  { %v251_v10 = vpack.c.bf16 %v225_v6, %v221_v5 }
 0x113   :  { %v252_v11 = vpack.c.bf16 %v227_v9, %v223_v8 }
 0x114   :  { %v267_v15 = vmax.bf16 %v919_v1, %v251_v10 }
 0x115   :  { %v230_v12 = vpop.f32.mrb[28].mxu0  ;;  %v268_v13 = vmax.bf16 %v919_v1, %v252_v11 }
 0x116   :  { %v232_v14 = vpop.f32.mrb[29].mxu0  ;;  %v231_v17 = vadd.f32 %v230_v12, %v1117_v50 }
 0x117   :  { %v234_v16 = vpop.f32.mrb[30].mxu0  ;;  %486 = vmatprep.mubr.bf16.mxu1 %v268_v13  ;;  %v233_v20 = vadd.f32 %v232_v14, %v1119_v52 }
 0x118   :  { %v235_v18 = vadd.f32 %v234_v16, %v1117_v50  ;;  %v236_v19 = vpop.f32.mrb[31].mxu0  ;;  %487 = vmatmul.mubr.bf16.gmra.mrb[24].mxu1 %v267_v15 }
 0x119   :  { %v237_v21 = vadd.f32 %v236_v19, %v1119_v52  ;;  %v1175_v52 = vld [vmem:[%s1266_s4] ss:$0 sm:$0xff] }
 0x11a   :  { %v253_v22 = vpack.c.bf16 %v235_v18, %v231_v17 }
 0x11b   :  { %v254_v23 = vpack.c.bf16 %v237_v21, %v233_v20 }
 0x11c   :  { %v269_v25 = vmax.bf16 %v919_v1, %v253_v22 }
 0x11d   :  { %v270_v24 = vmax.bf16 %v919_v1, %v254_v23 }
 0x11f   :  { %494 = vmatprep.mubr.bf16.mxu1 %v270_v24 }
 0x120   :  { %495 = vmatmul.mubr.bf16.gmra.mrb[28].mxu1 %v269_v25 }
 0x1bb   :  { %v782_v50 = vpop.f32.mrb[0].mxu1 }
 0x1bc   :  { %v783_v27 = vpop.f32.mrb[1].mxu1 }
 0x1bd   :  { %v784_v28 = vadd.f32 %v783_v27, %v782_v50  ;;  %v785_v29 = vpop.f32.mrb[2].mxu1 }
 0x1be   :  { %v786_v30 = vpop.f32.mrb[3].mxu1 }
 0x1bf   :  { %v787_v31 = vadd.f32 %v786_v30, %v785_v29  ;;  %v441_v32 = vadd.f32 %v784_v28, %v1175_v52 }
 0x1c1   :  { %v444_v33 = vadd.f32 %v787_v31, %v1175_v52 }
 0x1c3   :  { %v503_v34 = vpack.c.bf16 %v444_v33, %v441_v32  ;;  %v788_v35 = vpop.f32.mrb[4].mxu1 }
 0x1c4   :  { %v789_v36 = vpop.f32.mrb[5].mxu1 }
 0x1c5   :  { %v790_v37 = vadd.f32 %v789_v36, %v788_v35  ;;  %v791_v38 = vpop.f32.mrb[6].mxu1  ;;  %v511_v39 = vmax.bf16 %v919_v1, %v503_v34 }
 0x1c6   :  { %v792_v40 = vpop.f32.mrb[7].mxu1 }
 0x1c7   :  { %v793_v41 = vadd.f32 %v792_v40, %v791_v38  ;;  %847 = vmatprep.subr.bf16.mxu0 %v511_v39  ;;  %v449_v42 = vadd.f32 %v790_v37, %v1175_v52 }
 0x1c8   :  { %848 = vmatpush3.bf16.xpose.msra.mxu0 %v511_v39 }
 0x1c9   :  { %v452_v43 = vadd.f32 %v793_v41, %v1175_v52 }
 0x1cb   :  { %v504_v44 = vpack.c.bf16 %v452_v43, %v449_v42  ;;  %v794_v45 = vpop.f32.mrb[8].mxu1 }
 0x1cc   :  { %v795_v48 = vpop.f32.mrb[9].mxu1 }
 0x1cd   :  { %v796_v49 = vadd.f32 %v795_v48, %v794_v45  ;;  %v797_v51 = vpop.f32.mrb[10].mxu1  ;;  %v512_v53 = vmax.bf16 %v919_v1, %v504_v44  ;;  %v911_v48 = vld [vmem:[%s1265_s5 + $0x8] sm:$0xff]  }
 0x1ce   :  { %v798_v54 = vpop.f32.mrb[11].mxu1 }
 0x1cf   :  { %v799_v55 = vadd.f32 %v798_v54, %v797_v51  ;;  %849 = vmatprep.subr.bf16.mxu0 %v512_v53  ;;  %v457_v56 = vadd.f32 %v796_v49, %v1175_v52  ;;  %v912_v49 = vld [vmem:[%s1265_s5 + $0x10] sm:$0xff]   ;;  %v913_v51 = vld [vmem:[%s1265_s5 + $0x18] sm:$0xff]   ;;  %v16_v54 = vstv %s1269_s10 }
 0x1d0   :  { %850 = vmatpush3.bf16.xpose.msra.mxu0 %v512_v53  ;;  %v688_v53 = vld [vmem:[%s1268_s9] sm:$0xff]  ;;  %17 = vst [vmem:[#allocation2] sm:$0x1] %v16_v54 }
 0x1d1   :  { %v460_v57 = vadd.f32 %v799_v55, %v1175_v52  ;;  %692 = vperm.xlu0 %886, %v688_v53   ;;  %v689_v55 = vld [vmem:[%s1268_s9 + $0x8] sm:$0xff] }
 0x1d3   :  { %v505_v58 = vpack.c.bf16 %v460_v57, %v457_v56  ;;  %v800_v59 = vpop.f32.mrb[12].mxu1  ;;  %v529_v57 = vld [vmem:[%s1270_s6 + $0x10] sm:$0xff] }
 0x1d4   :  { %v801_v60 = vpop.f32.mrb[13].mxu1 }
 0x1d5   :  { %v802_v61 = vadd.f32 %v801_v60, %v800_v59  ;;  %v803_v62 = vpop.f32.mrb[14].mxu1  ;;  %v513_v63 = vmax.bf16 %v919_v1, %v505_v58  ;;  %697 = vperm.xlu0 %886, %v689_v55   ;;  %v530_v59 = vld [vmem:[%s1270_s6 + $0x18] sm:$0xff] }
 0x1d6   :  { %v804_v0 = vpop.f32.mrb[15].mxu1 }
 0x1d7   :  { %v805_v2 = vadd.f32 %v804_v0, %v803_v62  ;;  %851 = vmatprep.subr.bf16.mxu0 %v513_v63  ;;  %v465_v3 = vadd.f32 %v802_v61, %v1175_v52  ;;  %v709_v56 = vld [vmem:[#allocation2] sm:$0x1]  ;;  %v528_v62 = vld [vmem:[%s1270_s6 + $0x8] sm:$0xff] }
 0x1d8   :  { %852 = vmatpush3.bf16.xpose.msra.mxu0 %v513_v63  ;;  %712 = vperm.xlu1 %887, %v709_v56   ;;  %v527_v61 = vld [vmem:[%s1270_s6] sm:$0xff] }
 0x1d9   :  { %v468_v4 = vadd.f32 %v805_v2, %v1175_v52 }
 0x1db   :  { %v506_v5 = vpack.c.bf16 %v468_v4, %v465_v3  ;;  %v806_v6 = vpop.f32.mrb[16].mxu1 }
 0x1dc   :  { %v807_v7 = vpop.f32.mrb[17].mxu1 }
 0x1dd   :  { %v808_v8 = vadd.f32 %v807_v7, %v806_v6  ;;  %v809_v9 = vpop.f32.mrb[18].mxu1  ;;  %v514_v10 = vmax.bf16 %v919_v1, %v506_v5 }
 0x1de   :  { %v810_v11 = vpop.f32.mrb[19].mxu1 }
 0x1df   :  { %v811_v12 = vadd.f32 %v810_v11, %v809_v9  ;;  %853 = vmatprep.subr.bf16.mxu0 %v514_v10  ;;  %v473_v13 = vadd.f32 %v808_v8, %v1175_v52  ;;  %v533_v9 = vld [vmem:[%s1270_s6 + $0x30] sm:$0xff]  ;;  %v534_v11 = vld [vmem:[%s1270_s6 + $0x38] sm:$0xff] }
 0x1e0   :  { %854 = vmatpush3.bf16.xpose.msra.mxu0 %v514_v10 }
 0x1e1   :  { %v476_v14 = vadd.f32 %v811_v12, %v1175_v52 }
 0x1e3   :  { %v507_v15 = vpack.c.bf16 %v476_v14, %v473_v13  ;;  %v812_v16 = vpop.f32.mrb[20].mxu1  ;;  %v531_v13 = vld [vmem:[%s1270_s6 + $0x20] sm:$0xff]  ;;  %v532_v14 = vld [vmem:[%s1270_s6 + $0x28] sm:$0xff] }
 0x1e4   :  { %v813_v17 = vpop.f32.mrb[21].mxu1 }
 0x1e5   :  { %v814_v18 = vadd.f32 %v813_v17, %v812_v16  ;;  %v815_v19 = vpop.f32.mrb[22].mxu1  ;;  %v515_v20 = vmax.bf16 %v919_v1, %v507_v15 }
 0x1e6   :  { %v816_v21 = vpop.f32.mrb[23].mxu1 }
 0x1e7   :  { %v817_v22 = vadd.f32 %v816_v21, %v815_v19  ;;  %855 = vmatprep.subr.bf16.mxu0 %v515_v20  ;;  %v481_v23 = vadd.f32 %v814_v18, %v1175_v52 }
 0x1e8   :  { %856 = vmatpush3.bf16.xpose.msra.mxu0 %v515_v20 }
 0x1e9   :  { %v484_v24 = vadd.f32 %v817_v22, %v1175_v52 }
 0x1eb   :  { %v508_v25 = vpack.c.bf16 %v484_v24, %v481_v23  ;;  %v818_v26 = vpop.f32.mrb[24].mxu1 }
 0x1ec   :  { %v819_v50 = vpop.f32.mrb[25].mxu1 }
 0x1ed   :  { %v820_v27 = vadd.f32 %v819_v50, %v818_v26  ;;  %v821_v28 = vpop.f32.mrb[26].mxu1  ;;  %v516_v29 = vmax.bf16 %v919_v1, %v508_v25  ;;  %v914_v26 = vld [vmem:[%s1267_s7] sm:$0xff]  }
 0x1ee   :  { %v822_v30 = vpop.f32.mrb[27].mxu1  ;;  %v634_v50 = vld [vmem:[%s1271_s8] sm:$0xff] }
 0x1ef   :  { %v823_v31 = vadd.f32 %v822_v30, %v821_v28  ;;  %857 = vmatprep.subr.bf16.mxu0 %v516_v29  ;;  %v489_v32 = vadd.f32 %v820_v27, %v1175_v52 }
 0x1f0   :  { %858 = vmatpush3.bf16.xpose.msra.mxu0 %v516_v29  ;;  %v635_v29 = vld [vmem:[%s1271_s8 + $0x8] sm:$0xff] }
 0x1f1   :  { %v492_v33 = vadd.f32 %v823_v31, %v1175_v52 }
 0x1f3   :  { %v509_v34 = vpack.c.bf16 %v492_v33, %v489_v32  ;;  %v824_v35 = vpop.f32.mrb[28].mxu1 }
 0x1f4   :  { %v825_v36 = vpop.f32.mrb[29].mxu1 }
 0x1f5   :  { %v826_v37 = vadd.f32 %v825_v36, %v824_v35  ;;  %v827_v38 = vpop.f32.mrb[30].mxu1  ;;  %v517_v39 = vmax.bf16 %v919_v1, %v509_v34 }
 0x1f6   :  { %v828_v40 = vpop.f32.mrb[31].mxu1 }
 0x1f7   :  { %v829_v41 = vadd.f32 %v828_v40, %v827_v38  ;;  %859 = vmatprep.subr.bf16.mxu0 %v517_v39  ;;  %v497_v42 = vadd.f32 %v826_v37, %v1175_v52 }
 0x1f8   :  { %860 = vmatpush3.bf16.xpose.msra.mxu0 %v517_v39 }
 0x1f9   :  { %v500_v43 = vadd.f32 %v829_v41, %v1175_v52  ;;  %v920_v52 = vmov 0.0  }
 0x1fb   :  { %v510_v44 = vpack.c.bf16 %v500_v43, %v497_v42 }
 0x1fd   :  { %v518_v45 = vmax.bf16 %v919_v1, %v510_v44 }
 0x1ff   :  { %861 = vmatprep.subr.bf16.mxu0 %v518_v45 }
 0x200   :  { %862 = vmatpush3.bf16.xpose.msra.mxu0 %v518_v45 }
 0x201   :  { %871 = vmatprep.subr.bf16.mxu0 %v920_v52 }
 0x207   :  { %864 = vmatmul.mubr.bf16.vlgmr.msra.gmra.mrb[32].mxu0 %v911_v48 }
 0x208   :  { %867 = vmatprep.mubr.bf16.mxu0 %v912_v49 }
 0x20f   :  { %868 = vmatmul.mubr.bf16.gmra.mrb[36].mxu0 %v913_v51 }
 0x210   :  { %879 = vmatprep.mubr.msk.bf16.mxu0 %vm921_vm1, %v920_v52 }
 0x250   :  { %v693_v27 = vpop.permute.xlu0 %692 }
 0x254   :  { %v698_v36 = vpop.permute.xlu0 %697 }
 0x257   :  { %v713_v43 = vpop.permute.xlu1 %712 }
 0x258   :  { %v718_v48 = vrot.slane %v713_v43, %v73_v47 }
 0x2da   :  { %v865_v58 = vpop.f32.mrb[32].mxu0 }
 0x2db   :  { %v593_v60 = vpop.f32.mrb[33].mxu0  ;;  %v602_v0 = vadd.f32 %v865_v58, %v529_v57 }
 0x2dc   :  { %v866_v63 = vpop.f32.mrb[34].mxu0  ;;  %v594_v4 = vadd.f32 %v593_v60, %v527_v61 }
 0x2dd   :  { %v605_v2 = vadd.f32 %v866_v63, %v530_v59  ;;  %v596_v3 = vpop.f32.mrb[35].mxu0 }
 0x2de   :  { %v597_v5 = vadd.f32 %v596_v3, %v528_v62 }
 0x2df   :  { %v625_v6 = vpack.c.bf16 %v605_v2, %v602_v0 }
 0x2e0   :  { %v624_v7 = vpack.c.bf16 %v597_v5, %v594_v4 }
 0x2e1   :  { %v629_v19 = vmax.bf16 %v919_v1, %v625_v6 }
 0x2e2   :  { %v628_v8 = vmax.bf16 %v919_v1, %v624_v7  ;;  %v869_v10 = vpop.f32.mrb[36].mxu0 }
 0x2e3   :  { %v609_v12 = vpop.f32.mrb[37].mxu0  ;;  %v618_v16 = vadd.f32 %v869_v10, %v533_v9 }
 0x2e4   :  { %v870_v15 = vpop.f32.mrb[38].mxu0  ;;  %872 = vmatpush3.bf16.msra.mxu0 %v628_v8  ;;  %v610_v20 = vadd.f32 %v609_v12, %v531_v13 }
 0x2e5   :  { %v621_v17 = vadd.f32 %v870_v15, %v534_v11  ;;  %v612_v18 = vpop.f32.mrb[39].mxu0  ;;  %873 = vmatprep.subr.bf16.mxu0 %v920_v52 }
 0x2e6   :  { %v613_v21 = vadd.f32 %v612_v18, %v532_v14 }
 0x2e7   :  { %v627_v22 = vpack.c.bf16 %v621_v17, %v618_v16 }
 0x2e8   :  { %v626_v23 = vpack.c.bf16 %v613_v21, %v610_v20  ;;  %874 = vmatpush3.bf16.msra.mxu0 %v629_v19 }
 0x2e9   :  { %875 = vmatprep.subr.bf16.mxu0 %v920_v52  ;;  %v631_v25 = vmax.bf16 %v919_v1, %v627_v22 }
 0x2ea   :  { %v630_v24 = vmax.bf16 %v919_v1, %v626_v23 }
 0x2ec   :  { %876 = vmatpush3.bf16.msra.mxu0 %v630_v24 }
 0x2ed   :  { %877 = vmatprep.subr.bf16.mxu0 %v920_v52 }
 0x2f0   :  { %878 = vmatpush3.bf16.msra.mxu0 %v631_v25 }
 0x2f3   :  { %880 = vmatmul.mubr.msk.bf16.vlgmr.msra.gmra.mrb[40].mxu0 %vm641_vm2, %v914_v26 }
 0x3c6   :  { %v679_v28 = vpop.f32.mrb[40].mxu0 }
 0x3c7   :  { %v680_v30 = vadd.f32 %v679_v28, %v634_v50  ;;  %v881_v31 = vpop.f32.mrb[41].mxu0 }
 0x3c8   :  { %v682_v1 = vpop.f32.mrb[42].mxu0 }
 0x3c9   :  { %v686_v32 = vmax.f32 %v680_v30, 0.0  ;;  %v683_v33 = vadd.f32 %v682_v1, %v635_v29  ;;  %v882_v34 = vpop.f32.mrb[43].mxu0 }
 0x3cb   :  { %v687_v35 = vmax.f32 %v683_v33, 0.0  ;;  %v700_v37 = vmul.f32 %v693_v27, %v686_v32 }
 0x3cd   :  { %v701_v38 = vmul.f32 %v698_v36, %v687_v35 }
 0x3cf   :  { %v702_v39 = vadd.f32 %v701_v38, %v700_v37 }
 0x3d1   :  { %v703_v40 = vrot.slane %v702_v39, 4 }
 0x3d3   :  { %v704_v41 = vadd.f32 %v703_v40, %v702_v39 }
 0x3d5   :  { %v705_v42 = vrot.slane %v704_v41, 2 }
 0x3d7   :  { %v706_v44 = vadd.f32 %v705_v42, %v704_v41 }
 0x3d9   :  { %v707_v45 = vrot.slane %v706_v44, 1 }
 0x3db   :  { %v708_v49 = vadd.f32 %v707_v45, %v706_v44 }
 0x3dd   :  { %v719_v51 = vadd.f32 %v718_v48, %v708_v49 }
 0x3df   :  { %v720_v52 = vsub.f32 0.0, %v719_v51 }
 0x3e1   :  { %v721_v53 = vmul.f32 1.442695, %v720_v52 }
 0x3e3   :  { %915 = vpow2.f32 %v721_v53 }
 0x3ed   :  { %v916_v54 = vpop.eup %915 }
 0x3ee   :  { %v723_v55 = vadd.f32 1.0, %v916_v54 }
 0x3f0   :  { %917 = vrcp.f32 %v723_v55 }
 0x3fa   :  { %v918_v56 = vpop.eup %917 }
 0x3fb   :  { %726 = vst [vmem:[%s1272_s11] sm:$0x1] %v918_v56 }

</bundles_post_ra>
